<compile_context>
chip_gen: v7x
topology: tpu7x:2x2x1
jax: 0.10.0
libtpu: 0.0.40
codegen_flags: <defaults>
</compile_context>

<pallas_src>
import jax
import jax.numpy as jnp
from jax.experimental import pallas as pl
from jax.experimental.pallas import tpu as pltpu

# ---- static config (mirrors encoder_params at small sizes) ------------------
NODE_TYPE_NUM = 26
TABLE_NUM = 3
COLUMN_NUM = 8
NODE_TYPE_EMB = 16                    # encoder_node_type_embedding_dim
COLUMN_EMB = 8                        # encoder_column_embedding_dim
TABLE_COLUMNS_NUMBER = (3, 3, 2)      # static per-table column counts (sums to COLUMN_NUM)
N_NODES = 200                         # small test size; kernel scales with the grid

FEATURE_DIM = NODE_TYPE_NUM + 2 + TABLE_NUM + COLUMN_NUM * 8            # 95
PASS_DIM = 2 + TABLE_NUM                                                # stats + table_used = 5
HEAD_DIM = NODE_TYPE_EMB + PASS_DIM                                     # 21
GROUP = max(TABLE_COLUMNS_NUMBER)                                       # 3 column slots per table
POOL_W = TABLE_NUM * COLUMN_EMB                                         # 24-lane slot-major window
FUSED_DIM = HEAD_DIM + GROUP * POOL_W                                   # 21 + 72 = 93
OUT_DIM = HEAD_DIM + POOL_W                                             # 45

_NEG_FLOOR = float(jnp.finfo(jnp.float32).min)
_MAX_TILE = 8192            # ~16-18 MiB of double-buffered in+out VMEM (128-lane padded)
_SINGLE_TILE_MAX = 512      # below this: one full-array block (no 8-row alignment needed)


def _round_up(x, m):
    return ((x + m - 1) // m) * m


# ---- one-time parameter fusion (hoisted out of the forward path) -------------
def prepare_params(w_type, b_type, w_cols):
    """Fuse both Linears + passthrough into one (95, 93) weight, (1, 93) bias and
    a (1, 93) ReLU 'floor' vector.

    Fused output-lane layout (slot-major so per-table max-pool uses contiguous
    24-lane windows):
      [0:16)                     node-type encoding            (ReLU)
      [16:21)                    stats + table_used identity   (no ReLU)
      [21 + j*24 + t*8 : +8)     table t, column-slot j        (ReLU; unused
                                 slots are zero columns -> ReLU gives 0, which
                                 is exact under the >=0 max-pool)
    """
    w = jnp.zeros((FEATURE_DIM, FUSED_DIM), jnp.float32)
    # node-type Linear
    w = w.at[:NODE_TYPE_NUM, :NODE_TYPE_EMB].set(w_type.astype(jnp.float32))
    # identity passthrough for stats (2) + table_used (TABLE_NUM)
    pass_src = NODE_TYPE_NUM
    w = w.at[pass_src:pass_src + PASS_DIM,
             NODE_TYPE_EMB:NODE_TYPE_EMB + PASS_DIM].set(jnp.eye(PASS_DIM, dtype=jnp.float32))
    # per-column Linears, slot-major placement
    col_src = NODE_TYPE_NUM + 2 + TABLE_NUM
    c = 0
    for t, num in enumerate(TABLE_COLUMNS_NUMBER):
        for j in range(num):
            r0 = col_src + c * 8
            c0 = HEAD_DIM + j * POOL_W + t * COLUMN_EMB
            w = w.at[r0:r0 + 8, c0:c0 + COLUMN_EMB].set(w_cols[c].astype(jnp.float32))
            c += 1
    b = jnp.zeros((1, FUSED_DIM), jnp.float32).at[0, :NODE_TYPE_EMB].set(b_type.astype(jnp.float32))
    # selective-ReLU floor: 0.0 on ReLU lanes, float32 min on passthrough lanes
    floor = jnp.zeros((1, FUSED_DIM), jnp.float32)
    floor = floor.at[0, NODE_TYPE_EMB:NODE_TYPE_EMB + PASS_DIM].set(_NEG_FLOOR)
    return w, b, floor


# ---- Pallas kernel -----------------------------------------------------------
def feature_encoder_kernel(x_ref, w_ref, b_ref, floor_ref, o_ref):
    # one fused MXU dot: type-enc + passthrough + all column encodings
    h = jnp.dot(x_ref[...], w_ref[...], preferred_element_type=jnp.float32)
    # bias + selective ReLU via precomputed floor (no iota / compares / where)
    h = jnp.maximum(h + b_ref[...], floor_ref[...])                    # (tile_n, FUSED_DIM)

    # per-table max-pool: slot-major layout -> max over GROUP contiguous 24-lane windows
    pooled = h[:, HEAD_DIM:HEAD_DIM + POOL_W]
    for j in range(1, GROUP):                                          # static python loop (GROUP-1 maxima)
        lo = HEAD_DIM + j * POOL_W
        pooled = jnp.maximum(pooled, h[:, lo:lo + POOL_W])

    # single store per tile: [type_enc | stats | table_used | table_encs]
    o_ref[...] = jnp.concatenate([h[:, :HEAD_DIM], pooled], axis=1)    # (tile_n, OUT_DIM)


def feature_encoder(node_features, w_fused, b_fused, relu_floor, *, tile_n=None):
    """node_features: (N, FEATURE_DIM) f32; params from prepare_params."""
    n = node_features.shape[0]
    if tile_n is None:
        if n <= _SINGLE_TILE_MAX:
            tile_n = n                       # single block == full array dims (no padding needed)
        else:
            # >= 2 grid steps so ("parallel",) shards the node axis across both
            # TensorCores on v7x; large tiles amortize per-step overhead.
            tile_n = min(_MAX_TILE, _round_up(pl.cdiv(n, 2), 8))
    grid = (pl.cdiv(n, tile_n),)             # ragged tail handled by Pallas partial blocks

    # in/out tiles are double-buffered; last dims pad to 128 lanes in VMEM.
    vmem_need = 4 * tile_n * 128 * 4 + (1 << 20)

    cost = pl.CostEstimate(
        flops=2 * n * FEATURE_DIM * FUSED_DIM,
        transcendentals=0,
        bytes_accessed=n * (FEATURE_DIM + OUT_DIM) * 4 + FEATURE_DIM * FUSED_DIM * 4)

    return pl.pallas_call(
        feature_encoder_kernel,
        out_shape=jax.ShapeDtypeStruct((n, OUT_DIM), jnp.float32),
        grid=grid,
        in_specs=[
            pl.BlockSpec((tile_n, FEATURE_DIM), lambda i: (i, 0)),      # streamed node tiles
            pl.BlockSpec((FEATURE_DIM, FUSED_DIM), lambda i: (0, 0)),   # weights stay VMEM-resident
            pl.BlockSpec((1, FUSED_DIM), lambda i: (0, 0)),             # bias
            pl.BlockSpec((1, FUSED_DIM), lambda i: (0, 0)),             # ReLU floor
        ],
        out_specs=pl.BlockSpec((tile_n, OUT_DIM), lambda i: (i, 0)),    # keep 45 lanes (write-bound)
        compiler_params=pltpu.CompilerParams(
            dimension_semantics=("parallel",),                          # shard node axis across TCs
            vmem_limit_bytes=max(vmem_need, 32 << 20)),                 # big tiles fit on v5e too
        cost_estimate=cost,
    )(node_features, w_fused, b_fused, relu_floor)


# ---- pure-JAX reference (mirrors the PyTorch forward) ------------------------
def feature_encoder_ref(node_features, w_type, b_type, w_cols):
    nf0 = node_features[:, :NODE_TYPE_NUM]
    nf1 = node_features[:, NODE_TYPE_NUM:NODE_TYPE_NUM + 2]
    nf2 = node_features[:, NODE_TYPE_NUM + 2:NODE_TYPE_NUM + 2 + TABLE_NUM]
    nf3 = node_features[:, NODE_TYPE_NUM + 2 + TABLE_NUM:].reshape(-1, COLUMN_NUM, 8)
    type_enc = jax.nn.relu(nf0 @ w_type + b_type)
    col_enc = jax.nn.relu(jnp.einsum('ncf,cfe->nce', nf3, w_cols))      # (N, C, E2)
    parts = []
    start = 0
    for num in TABLE_COLUMNS_NUMBER:
        parts.append(col_enc[:, start:start + num].max(axis=1))
        start += num
    return jnp.concatenate([type_enc, nf1, nf2] + parts, axis=1)


if __name__ == "__main__":
    key = jax.random.PRNGKey(0)
    k1, k2, k3, k4 = jax.random.split(key, 4)
    # deterministic synthetic parameters (shapes from the module __init__)
    w_type = jax.random.normal(k1, (NODE_TYPE_NUM, NODE_TYPE_EMB), jnp.float32) * 0.1
    b_type = jax.random.normal(k2, (NODE_TYPE_EMB,), jnp.float32) * 0.1
    w_cols = jax.random.normal(k3, (COLUMN_NUM, 8, COLUMN_EMB), jnp.float32) * 0.1
    # synthetic node features
    node_features = jax.random.normal(k4, (N_NODES, FEATURE_DIM), jnp.float32)

    # fused params built once, outside the forward path
    w_fused, b_fused, relu_floor = jax.block_until_ready(
        prepare_params(w_type, b_type, w_cols))

    ref = feature_encoder_ref(node_features, w_type, b_type, w_cols)

    # 1) default tile selection: single full-array block at this size
    out = jax.block_until_ready(
        feature_encoder(node_features, w_fused, b_fused, relu_floor))
    assert out.shape == (N_NODES, OUT_DIM), out.shape
    assert jnp.allclose(out, ref, atol=1e-5, rtol=1e-5), "mismatch (default tile)"

    # 2) gridded / pipelined path with a ragged tail (200 rows, 64-row tiles)
    out2 = jax.block_until_ready(
        feature_encoder(node_features, w_fused, b_fused, relu_floor, tile_n=64))
    assert jnp.allclose(out2, ref, atol=1e-5, rtol=1e-5), "mismatch (ragged grid)"

    print("KERNEL_OK")
</pallas_src>

<mosaic_0001>
module attributes {stable_mosaic.version = 11 : i64} {
  func.func @feature_encoder_kernel(%arg0: i32, %arg1: memref<200x95xf32, #tpu.memory_space<vmem>>, %arg2: memref<95x93xf32, #tpu.memory_space<vmem>>, %arg3: memref<1x93xf32, #tpu.memory_space<vmem>>, %arg4: memref<1x93xf32, #tpu.memory_space<vmem>>, %arg5: memref<200x45xf32, #tpu.memory_space<vmem>>) attributes {dimension_semantics = [#tpu.dimension_semantics<parallel>], iteration_bounds = array<i64: 1>, scalar_prefetch = 0 : i64, scratch_operands = 0 : i64, tpu.core_type = #tpu.core_type<tc>, window_params = [{transform_indices = @transform_0, window_bounds = array<i64: 200, 95>}, {pipeline_mode = #tpu.pipeline_mode<synchronous>, transform_indices = @transform_1, window_bounds = array<i64: 95, 93>}, {pipeline_mode = #tpu.pipeline_mode<synchronous>, transform_indices = @transform_2, window_bounds = array<i64: 1, 93>}, {pipeline_mode = #tpu.pipeline_mode<synchronous>, transform_indices = @transform_3, window_bounds = array<i64: 1, 93>}, {transform_indices = @transform_4, window_bounds = array<i64: 200, 45>}]} {
    %c0 = arith.constant 0 : index
    %c0_0 = arith.constant 0 : index
    %0 = vector.load %arg1[%c0, %c0_0] : memref<200x95xf32, #tpu.memory_space<vmem>>, vector<200x95xf32>
    %c0_1 = arith.constant 0 : index
    %c0_2 = arith.constant 0 : index
    %1 = vector.load %arg2[%c0_1, %c0_2] : memref<95x93xf32, #tpu.memory_space<vmem>>, vector<95x93xf32>
    %cst = arith.constant dense<0.000000e+00> : vector<200x93xf32>
    %2 = tpu.matmul %0, %1, %cst {dimension_numbers = #tpu.dot_dimension_numbers<[1], [0], [0], [1], [0, 0, 1, 1], [], []>} : vector<200x95xf32>, vector<95x93xf32>, vector<200x93xf32> -> vector<200x93xf32>
    %c0_3 = arith.constant 0 : index
    %c0_4 = arith.constant 0 : index
    %3 = vector.load %arg3[%c0_3, %c0_4] : memref<1x93xf32, #tpu.memory_space<vmem>>, vector<1x93xf32>
    %4 = vector.broadcast %3 : vector<1x93xf32> to vector<200x93xf32>
    %5 = arith.addf %2, %4 : vector<200x93xf32>
    %c0_5 = arith.constant 0 : index
    %c0_6 = arith.constant 0 : index
    %6 = vector.load %arg4[%c0_5, %c0_6] : memref<1x93xf32, #tpu.memory_space<vmem>>, vector<1x93xf32>
    %7 = vector.broadcast %6 : vector<1x93xf32> to vector<200x93xf32>
    %8 = arith.maximumf %5, %7 : vector<200x93xf32>
    %9 = vector.extract_strided_slice %8 {offsets = [0, 21], sizes = [200, 24], strides = [1, 1]} : vector<200x93xf32> to vector<200x24xf32>
    %10 = vector.extract_strided_slice %8 {offsets = [0, 45], sizes = [200, 24], strides = [1, 1]} : vector<200x93xf32> to vector<200x24xf32>
    %11 = arith.maximumf %9, %10 : vector<200x24xf32>
    %12 = vector.extract_strided_slice %8 {offsets = [0, 69], sizes = [200, 24], strides = [1, 1]} : vector<200x93xf32> to vector<200x24xf32>
    %13 = arith.maximumf %11, %12 : vector<200x24xf32>
    %14 = vector.extract_strided_slice %8 {offsets = [0, 0], sizes = [200, 21], strides = [1, 1]} : vector<200x93xf32> to vector<200x21xf32>
    %15 = tpu.concatenate %14, %13 in 1 : vector<200x21xf32>, vector<200x24xf32> -> vector<200x45xf32>
    %c0_7 = arith.constant 0 : index
    %c0_8 = arith.constant 0 : index
    %16 = vector.load %arg5[%c0_7, %c0_8] : memref<200x45xf32, #tpu.memory_space<vmem>>, vector<200x45xf32>
    tpu.vector_store %arg5[%c0_7, %c0_8], %15 {strides = array<i32>} : memref<200x45xf32, #tpu.memory_space<vmem>>, vector<200x45xf32>,
    return
  }
  func.func @transform_0(%arg0: i32) -> (i32, i32) {
    %c0_i32 = arith.constant 0 : i32
    %c0_i32_0 = arith.constant 0 : i32
    return %arg0, %c0_i32 : i32, i32
  }
  func.func @transform_1(%arg0: i32) -> (i32, i32) {
    %c0_i32 = arith.constant 0 : i32
    %c0_i32_0 = arith.constant 0 : i32
    %c0_i32_1 = arith.constant 0 : i32
    return %c0_i32, %c0_i32_0 : i32, i32
  }
  func.func @transform_2(%arg0: i32) -> (i32, i32) {
    %c0_i32 = arith.constant 0 : i32
    %c0_i32_0 = arith.constant 0 : i32
    %c0_i32_1 = arith.constant 0 : i32
    return %c0_i32, %c0_i32_0 : i32, i32
  }
  func.func @transform_3(%arg0: i32) -> (i32, i32) {
    %c0_i32 = arith.constant 0 : i32
    %c0_i32_0 = arith.constant 0 : i32
    %c0_i32_1 = arith.constant 0 : i32
    return %c0_i32, %c0_i32_0 : i32, i32
  }
  func.func @transform_4(%arg0: i32) -> (i32, i32) {
    %c0_i32 = arith.constant 0 : i32
    %c0_i32_0 = arith.constant 0 : i32
    return %arg0, %c0_i32 : i32, i32
  }
}

</mosaic_0001>

<bundles_post_ra>
// kernel: tpu_custom_call.1
= control target key start
LH: loop header
LB: loop body
LE: loop exit
PB: predicated region body
PF: predicated region fallthrough
CT: control target
= control target key end

     0   :  { %v845_v0 = vmov 0.0|0.0   ;;  %vm846_vm0 = vmmov 0   ;;  %v847_v6 = vmov 0.0   ;;  %vm137_vm1 = vcmask 1046528   ;;  %s1453_s1 = inlined_call_operand.vmem [shape: f32[95,93], index: 1, kind: input, shape index: {}]   ;;  %s1454_s0 = inlined_call_operand.vmem [shape: f32[200,95], index: 0, kind: input, shape index: {}]   ;;  %s1455_s2 = inlined_call_operand.vmem [shape: f32[1,93], index: 2, kind: input, shape index: {}]   ;;  %s1456_s3 = inlined_call_operand.vmem [shape: f32[1,93], index: 3, kind: input, shape index: {}]   ;;  %s1457_s4 = inlined_call_operand.vmem [shape: f32[200,45], index: 4, kind: output, shape index: {}]  }
   0x1   :  { %808 = vmatprep.subr.bf16.mxu0 %v845_v0  ;;  %827 = vmatprep.subr.bf16.mxu1 %v845_v0  ;;  %v42_v1 = vld [vmem:[%s1453_s1] sm:$0xff]  ;;  %v43_v2 = vld [vmem:[%s1453_s1 + $0x8] sm:$0xff]  ;;  %v44_v3 = vld [vmem:[%s1453_s1 + $0x10] sm:$0xff]  ;;  %vm848_vm2 = vmmov 1   ;;  %vm61_vm4 = vcmask 777216   ;;  %vm588_vm5 = vcmask 171008  }
   0x2   :  { %v809_v4 = vpack.c.bf16 %v43_v2, %v42_v1  ;;  %v45_v5 = vld [vmem:[%s1453_s1 + $0x18] sm:$0xff]  ;;  %733 = vmatprep.mubr.msk.f32.mxu0 %vm846_vm0, %v847_v6  ;;  %772 = vmatprep.mubr.msk.f32.mxu1 %vm846_vm0, %v847_v6  ;;  %v46_v8 = vld [vmem:[%s1453_s1 + $0x20] sm:$0xff]  ;;  %v47_v9 = vld [vmem:[%s1453_s1 + $0x28] sm:$0xff]  ;;  %vm614_vm6 = vcmask 367616  }
   0x3   :  { %v812_v7 = vpack.c.bf16 %v45_v5, %v44_v3  ;;  %v815_v10 = vpack.c.bf16 %v47_v9, %v46_v8  ;;  %v48_v11 = vld [vmem:[%s1453_s1 + $0x30] sm:$0xff]  ;;  %v49_v12 = vld [vmem:[%s1453_s1 + $0x38] sm:$0xff]  ;;  %v50_v14 = vld [vmem:[%s1453_s1 + $0x40] sm:$0xff] }
   0x4   :  { %810 = vmatpush3.bf16.msra.mxu0 %v809_v4  ;;  %833 = vmatpush3.bf16.msra.mxu1 %v809_v4  ;;  %v818_v13 = vpack.c.bf16 %v49_v12, %v48_v11  ;;  %v51_v15 = vld [vmem:[%s1453_s1 + $0x48] sm:$0xff]  ;;  %v52_v17 = vld [vmem:[%s1453_s1 + $0x50] sm:$0xff]  ;;  %v53_v18 = vld [vmem:[%s1453_s1 + $0x58] sm:$0x7f] }
   0x5   :  { %811 = vmatprep.subr.bf16.mxu0 %v845_v0  ;;  %828 = vmatprep.subr.bf16.mxu1 %v845_v0  ;;  %v821_v16 = vpack.c.bf16 %v51_v15, %v50_v14  ;;  %v824_v19 = vpack.c.bf16 %v53_v18, %v52_v17  ;;  %vm825_vm3 = vmpackc.low %vm137_vm1, %vm848_vm2  ;;  %v17_v20 = vld [vmem:[%s1454_s0] sm:$0xff]  ;;  %v30_v21 = vld [vmem:[%s1454_s0 + $0x68] sm:$0xff] }
   0x6   :  { %v18_v22 = vld [vmem:[%s1454_s0 + $0x8] sm:$0xff]  ;;  %v31_v23 = vld [vmem:[%s1454_s0 + $0x70] sm:$0xff]  ;;  %v32_v25 = vld [vmem:[%s1454_s0 + $0x78] sm:$0xff] }
   0x7   :  { %v19_v24 = vld [vmem:[%s1454_s0 + $0x10] sm:$0xff]  ;;  %v20_v26 = vld [vmem:[%s1454_s0 + $0x18] sm:$0xff]  ;;  %v33_v27 = vld [vmem:[%s1454_s0 + $0x80] sm:$0xff] }
   0x8   :  { %813 = vmatpush3.bf16.msra.mxu0 %v812_v7  ;;  %834 = vmatpush3.bf16.msra.mxu1 %v812_v7  ;;  %v21_v28 = vld [vmem:[%s1454_s0 + $0x20] sm:$0xff]  ;;  %v34_v29 = vld [vmem:[%s1454_s0 + $0x88] sm:$0xff]  ;;  %v35_v31 = vld [vmem:[%s1454_s0 + $0x90] sm:$0xff] }
   0x9   :  { %814 = vmatprep.subr.bf16.mxu0 %v845_v0  ;;  %829 = vmatprep.subr.bf16.mxu1 %v845_v0  ;;  %v22_v30 = vld [vmem:[%s1454_s0 + $0x28] sm:$0xff]  ;;  %v23_v32 = vld [vmem:[%s1454_s0 + $0x30] sm:$0xff]  ;;  %v36_v33 = vld [vmem:[%s1454_s0 + $0x98] sm:$0xff] }
   0xa   :  { %v24_v34 = vld [vmem:[%s1454_s0 + $0x38] sm:$0xff]  ;;  %v37_v35 = vld [vmem:[%s1454_s0 + $0xa0] sm:$0xff]  ;;  %v38_v37 = vld [vmem:[%s1454_s0 + $0xa8] sm:$0xff] }
   0xb   :  { %v25_v36 = vld [vmem:[%s1454_s0 + $0x40] sm:$0xff]  ;;  %v26_v38 = vld [vmem:[%s1454_s0 + $0x48] sm:$0xff]  ;;  %v39_v39 = vld [vmem:[%s1454_s0 + $0xb0] sm:$0xff] }
   0xc   :  { %816 = vmatpush3.bf16.msra.mxu0 %v815_v10  ;;  %835 = vmatpush3.bf16.msra.mxu1 %v815_v10  ;;  %v27_v40 = vld [vmem:[%s1454_s0 + $0x50] sm:$0xff]  ;;  %v40_v41 = vld [vmem:[%s1454_s0 + $0xb8] sm:$0xff]  ;;  %v41_v42 = vld [vmem:[%s1454_s0 + $0xc0] sm:$0xff] }
   0xd   :  { %817 = vmatprep.subr.bf16.mxu0 %v845_v0  ;;  %830 = vmatprep.subr.bf16.mxu1 %v845_v0  ;;  %v28_v43 = vld [vmem:[%s1454_s0 + $0x58] sm:$0xff]  ;;  %v29_v44 = vld [vmem:[%s1454_s0 + $0x60] sm:$0xff]  ;;  %s849_s0 = smov 104  }
   0xe   :  { %v1065_v45 = vld [vmem:[%s1455_s2] ss:$0 sm:$0xff]  ;;  %s850_s2 = smov 80  }
   0xf   :  { %v1070_v47 = vld [vmem:[%s1456_s3] ss:$0 sm:$0xff] }
  0x10   :  { %819 = vmatpush3.bf16.msra.mxu0 %v818_v13  ;;  %836 = vmatpush3.bf16.msra.mxu1 %v818_v13 }
  0x11   :  { %820 = vmatprep.subr.bf16.mxu0 %v845_v0  ;;  %831 = vmatprep.subr.bf16.mxu1 %v845_v0 }
  0x14   :  { %822 = vmatpush3.bf16.msra.mxu0 %v821_v16  ;;  %837 = vmatpush3.bf16.msra.mxu1 %v821_v16 }
  0x15   :  { %823 = vmatprep.subr.bf16.mxu0 %v845_v0  ;;  %832 = vmatprep.subr.bf16.mxu1 %v845_v0 }
  0x18   :  { %826 = vmatpush3.bf16.msk.msra.mxu0 %vm825_vm3, %v824_v19  ;;  %838 = vmatpush3.bf16.msk.msra.mxu1 %vm825_vm3, %v824_v19 }
  0x1b   :  { %734 = vmatmul.mubr.msk.f32.vlgmr.msra.gmra.mrb[0].mxu0 %vm61_vm4, %v17_v20  ;;  %773 = vmatmul.mubr.msk.f32.vlgmr.msra.gmra.mrb[0].mxu1 %vm61_vm4, %v30_v21 }
  0x1c   :  { %736 = vmatprep.mubr.msk.f32.mxu0 %vm846_vm0, %v847_v6  ;;  %775 = vmatprep.mubr.msk.f32.mxu1 %vm846_vm0, %v847_v6 }
  0x1f   :  { %737 = vmatmul.mubr.msk.f32.gmra.mrb[2].mxu0 %vm61_vm4, %v18_v22  ;;  %776 = vmatmul.mubr.msk.f32.gmra.mrb[2].mxu1 %vm61_vm4, %v31_v23 }
  0x20   :  { %739 = vmatprep.mubr.msk.f32.mxu0 %vm846_vm0, %v847_v6  ;;  %778 = vmatprep.mubr.msk.f32.mxu1 %vm846_vm0, %v847_v6 }
  0x23   :  { %740 = vmatmul.mubr.msk.f32.gmra.mrb[4].mxu0 %vm61_vm4, %v19_v24  ;;  %779 = vmatmul.mubr.msk.f32.gmra.mrb[4].mxu1 %vm61_vm4, %v32_v25 }
  0x24   :  { %742 = vmatprep.mubr.msk.f32.mxu0 %vm846_vm0, %v847_v6  ;;  %781 = vmatprep.mubr.msk.f32.mxu1 %vm846_vm0, %v847_v6 }
  0x27   :  { %743 = vmatmul.mubr.msk.f32.gmra.mrb[6].mxu0 %vm61_vm4, %v20_v26  ;;  %782 = vmatmul.mubr.msk.f32.gmra.mrb[6].mxu1 %vm61_vm4, %v33_v27 }
  0x28   :  { %745 = vmatprep.mubr.msk.f32.mxu0 %vm846_vm0, %v847_v6  ;;  %784 = vmatprep.mubr.msk.f32.mxu1 %vm846_vm0, %v847_v6 }
  0x2b   :  { %746 = vmatmul.mubr.msk.f32.gmra.mrb[8].mxu0 %vm61_vm4, %v21_v28  ;;  %785 = vmatmul.mubr.msk.f32.gmra.mrb[8].mxu1 %vm61_vm4, %v34_v29 }
  0x2c   :  { %748 = vmatprep.mubr.msk.f32.mxu0 %vm846_vm0, %v847_v6  ;;  %787 = vmatprep.mubr.msk.f32.mxu1 %vm846_vm0, %v847_v6 }
  0x2f   :  { %749 = vmatmul.mubr.msk.f32.gmra.mrb[10].mxu0 %vm61_vm4, %v22_v30  ;;  %788 = vmatmul.mubr.msk.f32.gmra.mrb[10].mxu1 %vm61_vm4, %v35_v31 }
  0x30   :  { %751 = vmatprep.mubr.msk.f32.mxu0 %vm846_vm0, %v847_v6  ;;  %790 = vmatprep.mubr.msk.f32.mxu1 %vm846_vm0, %v847_v6 }
  0x33   :  { %752 = vmatmul.mubr.msk.f32.gmra.mrb[12].mxu0 %vm61_vm4, %v23_v32  ;;  %791 = vmatmul.mubr.msk.f32.gmra.mrb[12].mxu1 %vm61_vm4, %v36_v33 }
  0x34   :  { %754 = vmatprep.mubr.msk.f32.mxu0 %vm846_vm0, %v847_v6  ;;  %793 = vmatprep.mubr.msk.f32.mxu1 %vm846_vm0, %v847_v6 }
  0x37   :  { %755 = vmatmul.mubr.msk.f32.gmra.mrb[14].mxu0 %vm61_vm4, %v24_v34  ;;  %794 = vmatmul.mubr.msk.f32.gmra.mrb[14].mxu1 %vm61_vm4, %v37_v35 }
  0x38   :  { %757 = vmatprep.mubr.msk.f32.mxu0 %vm846_vm0, %v847_v6  ;;  %796 = vmatprep.mubr.msk.f32.mxu1 %vm846_vm0, %v847_v6 }
  0x3b   :  { %758 = vmatmul.mubr.msk.f32.gmra.mrb[16].mxu0 %vm61_vm4, %v25_v36  ;;  %797 = vmatmul.mubr.msk.f32.gmra.mrb[16].mxu1 %vm61_vm4, %v38_v37 }
  0x3c   :  { %760 = vmatprep.mubr.msk.f32.mxu0 %vm846_vm0, %v847_v6  ;;  %799 = vmatprep.mubr.msk.f32.mxu1 %vm846_vm0, %v847_v6 }
  0x3f   :  { %761 = vmatmul.mubr.msk.f32.gmra.mrb[18].mxu0 %vm61_vm4, %v26_v38  ;;  %800 = vmatmul.mubr.msk.f32.gmra.mrb[18].mxu1 %vm61_vm4, %v39_v39 }
  0x40   :  { %763 = vmatprep.mubr.msk.f32.mxu0 %vm846_vm0, %v847_v6  ;;  %802 = vmatprep.mubr.msk.f32.mxu1 %vm846_vm0, %v847_v6 }
  0x43   :  { %764 = vmatmul.mubr.msk.f32.gmra.mrb[20].mxu0 %vm61_vm4, %v27_v40  ;;  %803 = vmatmul.mubr.msk.f32.gmra.mrb[20].mxu1 %vm61_vm4, %v40_v41 }
  0x44   :  { %805 = vmatprep.mubr.msk.f32.mxu1 %vm846_vm0, %v847_v6  ;;  %766 = vmatprep.mubr.msk.f32.mxu0 %vm846_vm0, %v847_v6 }
  0x47   :  { %806 = vmatmul.mubr.msk.f32.gmra.mrb[22].mxu1 %vm61_vm4, %v41_v42  ;;  %767 = vmatmul.mubr.msk.f32.gmra.mrb[22].mxu0 %vm61_vm4, %v28_v43 }
  0x48   :  { %769 = vmatprep.mubr.msk.f32.mxu0 %vm846_vm0, %v847_v6 }
  0x4b   :  { %770 = vmatmul.mubr.msk.f32.gmra.mrb[24].mxu0 %vm61_vm4, %v29_v44 }
  0xee   :  { %v207_v46 = vpop.f32.mrb[0].mxu0  ;;  %v272_v48 = vpop.f32.mrb[0].mxu1 }
  0xef   :  { %v208_v49 = vadd.f32 %v1065_v45, %v207_v46  ;;  %v273_v50 = vadd.f32 %v1065_v45, %v272_v48  ;;  %v735_v51 = vpop.f32.mrb[1].mxu0  ;;  %v774_v52 = vpop.f32.mrb[1].mxu1 }
  0xf1   :  { %v1075_v53 = vmax.f32 %v208_v49, %v1070_v47  ;;  %v1078_v54 = vmax.f32 %v273_v50, %v1070_v47 }
  0xf2   :  { %v212_v55 = vpop.f32.mrb[2].mxu0  ;;  %v277_v56 = vpop.f32.mrb[2].mxu1 }
  0xf3   :  { %414 = vrot.lane.b32.xlu1 %v1078_v54, %s849_s0  ;;  %388 = vrot.lane.b32.xlu0 %v1075_v53, %s849_s0  ;;  %v213_v57 = vadd.f32 %v1065_v45, %v212_v55  ;;  %v278_v58 = vadd.f32 %v1065_v45, %v277_v56  ;;  %v738_v59 = vpop.f32.mrb[3].mxu0  ;;  %v777_v60 = vpop.f32.mrb[3].mxu1 }
  0xf5   :  { %v1087_v63 = vmax.f32 %v213_v57, %v1070_v47  ;;  %v1090_v0 = vmax.f32 %v278_v58, %v1070_v47 }
  0xf6   :  { %v217_v61 = vpop.f32.mrb[4].mxu0  ;;  %v282_v62 = vpop.f32.mrb[4].mxu1 }
  0xf7   :  { %488 = vrot.lane.b32.xlu1 %v1075_v53, %s850_s2  ;;  %514 = vrot.lane.b32.xlu0 %v1078_v54, %s850_s2  ;;  %v218_v1 = vadd.f32 %v1065_v45, %v217_v61  ;;  %v741_v2 = vpop.f32.mrb[5].mxu0  ;;  %v780_v3 = vpop.f32.mrb[5].mxu1  ;;  %v283_v7 = vadd.f32 %v1065_v45, %v282_v62 }
  0xf9   :  { %v1098_v6 = vmax.f32 %v218_v1, %v1070_v47  ;;  %v1106_v12 = vmax.f32 %v283_v7, %v1070_v47 }
  0xfa   :  { %v222_v4 = vpop.f32.mrb[6].mxu0  ;;  %v287_v5 = vpop.f32.mrb[6].mxu1 }
  0xfb   :  { %516 = vrot.lane.b32.xlu1 %v1090_v0, %s850_s2  ;;  %390 = vrot.lane.b32.xlu0 %v1087_v63, %s849_s0  ;;  %v744_v8 = vpop.f32.mrb[7].mxu0  ;;  %v783_v9 = vpop.f32.mrb[7].mxu1  ;;  %v223_v17 = vadd.f32 %v1065_v45, %v222_v4  ;;  %v288_v18 = vadd.f32 %v1065_v45, %v287_v5 }
  0xfd   :  { %v1119_v23 = vmax.f32 %v223_v17, %v1070_v47  ;;  %v1122_v24 = vmax.f32 %v288_v18, %v1070_v47 }
  0xfe   :  { %v227_v10 = vpop.f32.mrb[8].mxu0  ;;  %v292_v11 = vpop.f32.mrb[8].mxu1 }
  0xff   :  { %416 = vrot.lane.b32.xlu0 %v1090_v0, %s849_s0  ;;  %392 = vrot.lane.b32.xlu1 %v1098_v6, %s849_s0  ;;  %v747_v13 = vpop.f32.mrb[9].mxu0  ;;  %v786_v14 = vpop.f32.mrb[9].mxu1  ;;  %v228_v27 = vadd.f32 %v1065_v45, %v227_v10  ;;  %v293_v30 = vadd.f32 %v1065_v45, %v292_v11 }
 0x101   :  { %v1139_v33 = vmax.f32 %v228_v27, %v1070_v47  ;;  %v1142_v36 = vmax.f32 %v293_v30, %v1070_v47 }
 0x102   :  { %v232_v15 = vpop.f32.mrb[10].mxu0  ;;  %v297_v16 = vpop.f32.mrb[10].mxu1 }
 0x103   :  { %490 = vrot.lane.b32.xlu0 %v1087_v63, %s850_s2  ;;  %418 = vrot.lane.b32.xlu1 %v1106_v12, %s849_s0  ;;  %v750_v19 = vpop.f32.mrb[11].mxu0  ;;  %v789_v20 = vpop.f32.mrb[11].mxu1  ;;  %v233_v43 = vadd.f32 %v1065_v45, %v232_v15  ;;  %v298_v48 = vadd.f32 %v1065_v45, %v297_v16 }
 0x105   :  { %v1171_v57 = vmax.f32 %v233_v43, %v1070_v47  ;;  %v1174_v60 = vmax.f32 %v298_v48, %v1070_v47 }
 0x106   :  { %v237_v21 = vpop.f32.mrb[12].mxu0  ;;  %v302_v22 = vpop.f32.mrb[12].mxu1 }
 0x107   :  { %518 = vrot.lane.b32.xlu0 %v1106_v12, %s850_s2  ;;  %492 = vrot.lane.b32.xlu1 %v1098_v6, %s850_s2  ;;  %v753_v25 = vpop.f32.mrb[13].mxu0  ;;  %v792_v26 = vpop.f32.mrb[13].mxu1  ;;  %v238_v5 = vadd.f32 %v1065_v45, %v237_v21  ;;  %v303_v9 = vadd.f32 %v1065_v45, %v302_v22 }
 0x109   :  { %v1203_v18 = vmax.f32 %v238_v5, %v1070_v47  ;;  %v1206_v19 = vmax.f32 %v303_v9, %v1070_v47 }
 0x10a   :  { %v1129_v28 = vpop.f32.mrb[14].mxu0  ;;  %v1131_v29 = vpop.f32.mrb[14].mxu1 }
 0x10b   :  { %420 = vrot.lane.b32.xlu0 %v1122_v24, %s849_s0  ;;  %394 = vrot.lane.b32.xlu1 %v1119_v23, %s849_s0  ;;  %v756_v31 = vpop.f32.mrb[15].mxu0  ;;  %v795_v32 = vpop.f32.mrb[15].mxu1  ;;  %v243_v25 = vadd.f32 %v1065_v45, %v1129_v28  ;;  %v308_v26 = vadd.f32 %v1065_v45, %v1131_v29 }
 0x10d   :  { %v1225_v27 = vmax.f32 %v243_v25, %v1070_v47  ;;  %v1228_v30 = vmax.f32 %v308_v26, %v1070_v47 }
 0x10e   :  { %v247_v34 = vpop.f32.mrb[16].mxu0  ;;  %v312_v35 = vpop.f32.mrb[16].mxu1 }
 0x10f   :  { %494 = vrot.lane.b32.xlu0 %v1119_v23, %s850_s2  ;;  %520 = vrot.lane.b32.xlu1 %v1122_v24, %s850_s2  ;;  %v248_v37 = vadd.f32 %v1065_v45, %v247_v34  ;;  %v313_v38 = vadd.f32 %v1065_v45, %v312_v35  ;;  %v759_v39 = vpop.f32.mrb[17].mxu0  ;;  %v798_v40 = vpop.f32.mrb[17].mxu1 }
 0x111   :  { %v1151_v41 = vmax.f32 %v248_v37, %v1070_v47  ;;  %v1154_v42 = vmax.f32 %v313_v38, %v1070_v47 }
 0x112   :  { %v252_v44 = vpop.f32.mrb[18].mxu0  ;;  %v317_v46 = vpop.f32.mrb[18].mxu1 }
 0x113   :  { %422 = vrot.lane.b32.xlu1 %v1142_v36, %s849_s0  ;;  %396 = vrot.lane.b32.xlu0 %v1139_v33, %s849_s0  ;;  %v253_v49 = vadd.f32 %v1065_v45, %v252_v44  ;;  %v318_v50 = vadd.f32 %v1065_v45, %v317_v46  ;;  %v762_v51 = vpop.f32.mrb[19].mxu0  ;;  %v801_v52 = vpop.f32.mrb[19].mxu1 }
 0x115   :  { %v1165_v55 = vmax.f32 %v253_v49, %v1070_v47  ;;  %v1168_v56 = vmax.f32 %v318_v50, %v1070_v47 }
 0x116   :  { %v257_v58 = vpop.f32.mrb[20].mxu0  ;;  %v322_v59 = vpop.f32.mrb[20].mxu1 }
 0x117   :  { %496 = vrot.lane.b32.xlu1 %v1139_v33, %s850_s2  ;;  %522 = vrot.lane.b32.xlu0 %v1142_v36, %s850_s2  ;;  %v258_v61 = vadd.f32 %v1065_v45, %v257_v58  ;;  %v323_v62 = vadd.f32 %v1065_v45, %v322_v59  ;;  %v765_v1 = vpop.f32.mrb[21].mxu0  ;;  %v804_v2 = vpop.f32.mrb[21].mxu1 }
 0x119   :  { %v1183_v3 = vmax.f32 %v258_v61, %v1070_v47  ;;  %v1186_v4 = vmax.f32 %v323_v62, %v1070_v47 }
 0x11a   :  { %v327_v7 = vpop.f32.mrb[22].mxu1  ;;  %v262_v8 = vpop.f32.mrb[22].mxu0 }
 0x11b   :  { %424 = vrot.lane.b32.xlu0 %v1174_v60, %s849_s0  ;;  %398 = vrot.lane.b32.xlu1 %v1171_v57, %s849_s0  ;;  %v328_v10 = vadd.f32 %v1065_v45, %v327_v7  ;;  %v807_v11 = vpop.f32.mrb[23].mxu1  ;;  %v263_v13 = vadd.f32 %v1065_v45, %v262_v8  ;;  %v768_v14 = vpop.f32.mrb[23].mxu0 }
 0x11d   :  { %v1197_v15 = vmax.f32 %v328_v10, %v1070_v47  ;;  %v1200_v16 = vmax.f32 %v263_v13, %v1070_v47 }
 0x11e   :  { %v267_v17 = vpop.f32.mrb[24].mxu0 }
 0x11f   :  { %498 = vrot.lane.b32.xlu0 %v1171_v57, %s850_s2  ;;  %524 = vrot.lane.b32.xlu1 %v1174_v60, %s850_s2  ;;  %v268_v20 = vadd.f32 %v1065_v45, %v267_v17  ;;  %v771_v21 = vpop.f32.mrb[25].mxu0 }
 0x121   :  { %v1214_v22 = vmax.f32 %v268_v20, %v1070_v47 }
 0x123   :  { %426 = vrot.lane.b32.xlu1 %v1206_v19, %s849_s0  ;;  %400 = vrot.lane.b32.xlu0 %v1203_v18, %s849_s0 }
 0x127   :  { %500 = vrot.lane.b32.xlu1 %v1203_v18, %s850_s2  ;;  %526 = vrot.lane.b32.xlu0 %v1206_v19, %s850_s2 }
 0x12b   :  { %428 = vrot.lane.b32.xlu0 %v1228_v30, %s849_s0  ;;  %402 = vrot.lane.b32.xlu1 %v1225_v27, %s849_s0 }
 0x12f   :  { %502 = vrot.lane.b32.xlu0 %v1225_v27, %s850_s2  ;;  %528 = vrot.lane.b32.xlu1 %v1228_v30, %s850_s2 }
 0x133   :  { %430 = vrot.lane.b32.xlu1 %v1154_v42, %s849_s0  ;;  %404 = vrot.lane.b32.xlu0 %v1151_v41, %s849_s0 }
 0x137   :  { %504 = vrot.lane.b32.xlu1 %v1151_v41, %s850_s2  ;;  %530 = vrot.lane.b32.xlu0 %v1154_v42, %s850_s2 }
 0x13b   :  { %432 = vrot.lane.b32.xlu0 %v1168_v56, %s849_s0  ;;  %406 = vrot.lane.b32.xlu1 %v1165_v55, %s849_s0 }
 0x13f   :  { %506 = vrot.lane.b32.xlu0 %v1165_v55, %s850_s2  ;;  %532 = vrot.lane.b32.xlu1 %v1168_v56, %s850_s2 }
 0x143   :  { %434 = vrot.lane.b32.xlu1 %v1186_v4, %s849_s0  ;;  %408 = vrot.lane.b32.xlu0 %v1183_v3, %s849_s0 }
 0x147   :  { %508 = vrot.lane.b32.xlu1 %v1183_v3, %s850_s2  ;;  %436 = vrot.lane.b32.xlu0 %v1197_v15, %s849_s0 }
 0x14b   :  { %510 = vrot.lane.b32.xlu0 %v1200_v16, %s850_s2  ;;  %410 = vrot.lane.b32.xlu1 %v1200_v16, %s849_s0 }
 0x14f   :  { %512 = vrot.lane.b32.xlu1 %v1214_v22, %s850_s2  ;;  %412 = vrot.lane.b32.xlu0 %v1214_v22, %s849_s0 }
 0x153   :  { %536 = vrot.lane.b32.xlu1 %v1197_v15, %s850_s2  ;;  %534 = vrot.lane.b32.xlu0 %v1186_v4, %s850_s2 }
 0x165   :  { %v415_v45 = vpop.permute.xlu1 %414  ;;  %v389_v47 = vpop.permute.xlu0 %388 }
 0x166   :  { %v476_v28 = vmax.f32 %v1078_v54, %v415_v45  ;;  %v463_v29 = vmax.f32 %v1075_v53, %v389_v47 }
 0x169   :  { %v489_v31 = vpop.permute.xlu1 %488  ;;  %v515_v32 = vpop.permute.xlu0 %514 }
 0x16a   :  { %v563_v34 = vmax.f32 %v463_v29, %v489_v31  ;;  %v576_v35 = vmax.f32 %v476_v28, %v515_v32 }
 0x16c   :  { %v589_v37 = vsel %vm588_vm5, %v1075_v53, %v563_v34  ;;  %v602_v38 = vsel %vm588_vm5, %v1078_v54, %v576_v35 }
 0x16d   :  { %615 = vst.msk [vmem:[%s1457_s4] sm:$0xff] %vm614_vm6, %v589_v37  ;;  %628 = vst.msk [vmem:[%s1457_s4 + $0x68] sm:$0xff] %vm614_vm6, %v602_v38  ;;  %v517_v39 = vpop.permute.xlu1 %516  ;;  %v391_v40 = vpop.permute.xlu0 %390 }
 0x16e   :  { %v464_v53 = vmax.f32 %v1087_v63, %v391_v40 }
 0x171   :  { %v417_v43 = vpop.permute.xlu0 %416  ;;  %v393_v44 = vpop.permute.xlu1 %392 }
 0x172   :  { %v477_v46 = vmax.f32 %v1090_v0, %v417_v43  ;;  %v465_v52 = vmax.f32 %v1098_v6, %v393_v44 }
 0x174   :  { %v577_v48 = vmax.f32 %v477_v46, %v517_v39 }
 0x175   :  { %v491_v54 = vpop.permute.xlu0 %490  ;;  %v419_v49 = vpop.permute.xlu1 %418 }
 0x176   :  { %v603_v50 = vsel %vm588_vm5, %v1090_v0, %v577_v48  ;;  %v564_v51 = vmax.f32 %v464_v53, %v491_v54  ;;  %v478_v59 = vmax.f32 %v1106_v12, %v419_v49 }
 0x177   :  { %629 = vst.msk [vmem:[%s1457_s4 + $0x70] sm:$0xff] %vm614_vm6, %v603_v50 }
 0x178   :  { %v590_v58 = vsel %vm588_vm5, %v1087_v63, %v564_v51 }
 0x179   :  { %616 = vst.msk [vmem:[%s1457_s4 + $0x8] sm:$0xff] %vm614_vm6, %v590_v58  ;;  %v519_v61 = vpop.permute.xlu0 %518  ;;  %v493_v0 = vpop.permute.xlu1 %492 }
 0x17a   :  { %v578_v62 = vmax.f32 %v478_v59, %v519_v61  ;;  %v565_v1 = vmax.f32 %v465_v52, %v493_v0 }
 0x17c   :  { %v604_v2 = vsel %vm588_vm5, %v1106_v12, %v578_v62  ;;  %v591_v5 = vsel %vm588_vm5, %v1098_v6, %v565_v1 }
 0x17d   :  { %630 = vst.msk [vmem:[%s1457_s4 + $0x78] sm:$0xff] %vm614_vm6, %v604_v2  ;;  %617 = vst.msk [vmem:[%s1457_s4 + $0x10] sm:$0xff] %vm614_vm6, %v591_v5  ;;  %v421_v63 = vpop.permute.xlu0 %420  ;;  %v395_v7 = vpop.permute.xlu1 %394 }
 0x17e   :  { %v479_v8 = vmax.f32 %v1122_v24, %v421_v63  ;;  %v466_v9 = vmax.f32 %v1119_v23, %v395_v7 }
 0x181   :  { %v495_v12 = vpop.permute.xlu0 %494  ;;  %v521_v10 = vpop.permute.xlu1 %520 }
 0x182   :  { %v566_v11 = vmax.f32 %v466_v9, %v495_v12  ;;  %v579_v6 = vmax.f32 %v479_v8, %v521_v10 }
 0x184   :  { %v592_v13 = vsel %vm588_vm5, %v1119_v23, %v566_v11  ;;  %v605_v14 = vsel %vm588_vm5, %v1122_v24, %v579_v6 }
 0x185   :  { %618 = vst.msk [vmem:[%s1457_s4 + $0x18] sm:$0xff] %vm614_vm6, %v592_v13  ;;  %631 = vst.msk [vmem:[%s1457_s4 + $0x80] sm:$0xff] %vm614_vm6, %v605_v14  ;;  %v423_v17 = vpop.permute.xlu1 %422  ;;  %v397_v20 = vpop.permute.xlu0 %396 }
 0x186   :  { %v480_v21 = vmax.f32 %v1142_v36, %v423_v17  ;;  %v467_v25 = vmax.f32 %v1139_v33, %v397_v20 }
 0x189   :  { %v497_v23 = vpop.permute.xlu1 %496  ;;  %v523_v26 = vpop.permute.xlu0 %522 }
 0x18a   :  { %v567_v45 = vmax.f32 %v467_v25, %v497_v23  ;;  %v580_v24 = vmax.f32 %v480_v21, %v523_v26 }
 0x18c   :  { %v593_v47 = vsel %vm588_vm5, %v1139_v33, %v567_v45  ;;  %v606_v28 = vsel %vm588_vm5, %v1142_v36, %v580_v24 }
 0x18d   :  { %619 = vst.msk [vmem:[%s1457_s4 + $0x20] sm:$0xff] %vm614_vm6, %v593_v47  ;;  %632 = vst.msk [vmem:[%s1457_s4 + $0x88] sm:$0xff] %vm614_vm6, %v606_v28  ;;  %v425_v29 = vpop.permute.xlu0 %424  ;;  %v399_v31 = vpop.permute.xlu1 %398 }
 0x18e   :  { %v481_v32 = vmax.f32 %v1174_v60, %v425_v29  ;;  %v468_v34 = vmax.f32 %v1171_v57, %v399_v31 }
 0x191   :  { %v499_v33 = vpop.permute.xlu0 %498  ;;  %v525_v35 = vpop.permute.xlu1 %524 }
 0x192   :  { %v568_v37 = vmax.f32 %v468_v34, %v499_v33  ;;  %v581_v36 = vmax.f32 %v481_v32, %v525_v35 }
 0x194   :  { %v594_v38 = vsel %vm588_vm5, %v1171_v57, %v568_v37  ;;  %v607_v39 = vsel %vm588_vm5, %v1174_v60, %v581_v36 }
 0x195   :  { %620 = vst.msk [vmem:[%s1457_s4 + $0x28] sm:$0xff] %vm614_vm6, %v594_v38  ;;  %633 = vst.msk [vmem:[%s1457_s4 + $0x90] sm:$0xff] %vm614_vm6, %v607_v39  ;;  %v427_v40 = vpop.permute.xlu1 %426  ;;  %v401_v43 = vpop.permute.xlu0 %400 }
 0x196   :  { %v482_v44 = vmax.f32 %v1206_v19, %v427_v40  ;;  %v469_v46 = vmax.f32 %v1203_v18, %v401_v43 }
 0x199   :  { %v501_v57 = vpop.permute.xlu1 %500  ;;  %v527_v53 = vpop.permute.xlu0 %526 }
 0x19a   :  { %v569_v48 = vmax.f32 %v469_v46, %v501_v57  ;;  %v582_v60 = vmax.f32 %v482_v44, %v527_v53 }
 0x19c   :  { %v595_v54 = vsel %vm588_vm5, %v1203_v18, %v569_v48  ;;  %v608_v49 = vsel %vm588_vm5, %v1206_v19, %v582_v60 }
 0x19d   :  { %621 = vst.msk [vmem:[%s1457_s4 + $0x30] sm:$0xff] %vm614_vm6, %v595_v54  ;;  %634 = vst.msk [vmem:[%s1457_s4 + $0x98] sm:$0xff] %vm614_vm6, %v608_v49  ;;  %v429_v50 = vpop.permute.xlu0 %428  ;;  %v403_v51 = vpop.permute.xlu1 %402 }
 0x19e   :  { %v483_v52 = vmax.f32 %v1228_v30, %v429_v50  ;;  %v470_v58 = vmax.f32 %v1225_v27, %v403_v51 }
 0x1a1   :  { %v503_v18 = vpop.permute.xlu0 %502  ;;  %v529_v59 = vpop.permute.xlu1 %528 }
 0x1a2   :  { %v570_v61 = vmax.f32 %v470_v58, %v503_v18  ;;  %v583_v19 = vmax.f32 %v483_v52, %v529_v59 }
 0x1a4   :  { %v596_v0 = vsel %vm588_vm5, %v1225_v27, %v570_v61  ;;  %v609_v62 = vsel %vm588_vm5, %v1228_v30, %v583_v19 }
 0x1a5   :  { %622 = vst.msk [vmem:[%s1457_s4 + $0x38] sm:$0xff] %vm614_vm6, %v596_v0  ;;  %635 = vst.msk [vmem:[%s1457_s4 + $0xa0] sm:$0xff] %vm614_vm6, %v609_v62  ;;  %v431_v1 = vpop.permute.xlu1 %430  ;;  %v405_v2 = vpop.permute.xlu0 %404 }
 0x1a6   :  { %v484_v5 = vmax.f32 %v1154_v42, %v431_v1  ;;  %v471_v63 = vmax.f32 %v1151_v41, %v405_v2 }
 0x1a9   :  { %v505_v27 = vpop.permute.xlu1 %504  ;;  %v531_v7 = vpop.permute.xlu0 %530 }
 0x1aa   :  { %v571_v8 = vmax.f32 %v471_v63, %v505_v27  ;;  %v584_v30 = vmax.f32 %v484_v5, %v531_v7 }
 0x1ac   :  { %v597_v9 = vsel %vm588_vm5, %v1151_v41, %v571_v8  ;;  %v610_v12 = vsel %vm588_vm5, %v1154_v42, %v584_v30 }
 0x1ad   :  { %623 = vst.msk [vmem:[%s1457_s4 + $0x40] sm:$0xff] %vm614_vm6, %v597_v9  ;;  %636 = vst.msk [vmem:[%s1457_s4 + $0xa8] sm:$0xff] %vm614_vm6, %v610_v12  ;;  %v433_v10 = vpop.permute.xlu0 %432  ;;  %v407_v11 = vpop.permute.xlu1 %406 }
 0x1ae   :  { %v485_v6 = vmax.f32 %v1168_v56, %v433_v10  ;;  %v472_v13 = vmax.f32 %v1165_v55, %v407_v11 }
 0x1b1   :  { %v507_v41 = vpop.permute.xlu0 %506  ;;  %v533_v14 = vpop.permute.xlu1 %532 }
 0x1b2   :  { %v572_v17 = vmax.f32 %v472_v13, %v507_v41  ;;  %v585_v42 = vmax.f32 %v485_v6, %v533_v14 }
 0x1b4   :  { %v598_v20 = vsel %vm588_vm5, %v1165_v55, %v572_v17  ;;  %v611_v21 = vsel %vm588_vm5, %v1168_v56, %v585_v42 }
 0x1b5   :  { %624 = vst.msk [vmem:[%s1457_s4 + $0x48] sm:$0xff] %vm614_vm6, %v598_v20  ;;  %637 = vst.msk [vmem:[%s1457_s4 + $0xb0] sm:$0xff] %vm614_vm6, %v611_v21  ;;  %v435_v25 = vpop.permute.xlu1 %434  ;;  %v409_v23 = vpop.permute.xlu0 %408 }
 0x1b6   :  { %v473_v26 = vmax.f32 %v1183_v3, %v409_v23 }
 0x1b9   :  { %v509_v45 = vpop.permute.xlu1 %508  ;;  %v437_v24 = vpop.permute.xlu0 %436 }
 0x1ba   :  { %v573_v55 = vmax.f32 %v473_v26, %v509_v45  ;;  %v487_v37 = vmax.f32 %v1197_v15, %v437_v24 }
 0x1bc   :  { %v599_v56 = vsel %vm588_vm5, %v1183_v3, %v573_v55  ;;  %v486_v3 = vmax.f32 %v1186_v4, %v435_v25 }
 0x1bd   :  { %625 = vst.msk [vmem:[%s1457_s4 + $0x50] sm:$0xff] %vm614_vm6, %v599_v56  ;;  %v511_v47 = vpop.permute.xlu0 %510  ;;  %v411_v28 = vpop.permute.xlu1 %410 }
 0x1be   :  { %v474_v29 = vmax.f32 %v1200_v16, %v411_v28 }
 0x1c0   :  { %v574_v31 = vmax.f32 %v474_v29, %v511_v47 }
 0x1c1   :  { %v513_v32 = vpop.permute.xlu1 %512  ;;  %v413_v34 = vpop.permute.xlu0 %412 }
 0x1c2   :  { %v600_v33 = vsel %vm588_vm5, %v1200_v16, %v574_v31  ;;  %v475_v35 = vmax.f32 %v1214_v22, %v413_v34 }
 0x1c3   :  { %626 = vst.msk [vmem:[%s1457_s4 + $0x58] sm:$0xff] %vm614_vm6, %v600_v33 }
 0x1c4   :  { %v575_v36 = vmax.f32 %v475_v35, %v513_v32 }
 0x1c5   :  { %v537_v38 = vpop.permute.xlu1 %536  ;;  %v535_v39 = vpop.permute.xlu0 %534 }
 0x1c6   :  { %v601_v40 = vsel %vm588_vm5, %v1214_v22, %v575_v36  ;;  %v587_v43 = vmax.f32 %v487_v37, %v537_v38  ;;  %v586_v44 = vmax.f32 %v486_v3, %v535_v39 }
 0x1c7   :  { %627 = vst.msk [vmem:[%s1457_s4 + $0x60] sm:$0xff] %vm614_vm6, %v601_v40 }
 0x1c8   :  { %v613_v16 = vsel %vm588_vm5, %v1197_v15, %v587_v43  ;;  %v612_v46 = vsel %vm588_vm5, %v1186_v4, %v586_v44 }
 0x1c9   :  { %639 = vst.msk [vmem:[%s1457_s4 + $0xc0] sm:$0xff] %vm614_vm6, %v613_v16  ;;  %638 = vst.msk [vmem:[%s1457_s4 + $0xb8] sm:$0xff] %vm614_vm6, %v612_v46 }

</bundles_post_ra>
